<compile_context>
chip_gen: v6e
topology: v6e:2x2x1
jax: 0.10.0
libtpu: 0.0.40
codegen_flags: <defaults>
</compile_context>

<pallas_src>
import jax
import jax.numpy as jnp
from jax.experimental import pallas as pl
from jax.experimental.pallas import tpu as pltpu


# --- Exact PyTorch module constants, layout W = (out_features, in_features).
#     All biases are zero in MyNetwork.__init__, so they are dropped entirely.
_W1 = [[0, 0, 1], [0, 1, 0], [1, 0, 0], [1, 1, 0], [0, 1, 1]]   # (5, 3)
_W2 = [[1, 1, -1, 0, 0], [0, 0, 1, 1, -1]]                       # (2, 5)
_W3 = [[1, 1], [1, -1], [1, 2]]                                  # (3, 2)
_W4 = [[1, -1, 0], [0, -1, 1]]                                   # (2, 3)
_W5 = [[0, 1], [1, 0]]                                           # (2, 2)
_W6 = [[1, -1], [1, 1]]                                          # (2, 2)
_W7 = [[1, -1]]                                                  # (1, 2)
_LAYERS_REF = [_W1, _W2, _W3, _W4, _W5, _W6, _W7]                # reference path

# Fused layers 5+6: W5 is a permutation and its input is already >= 0
# (post-ReLU), so relu(W5 @ y) == W5 @ y and the pair collapses to W6 @ W5.
_W56 = [[-1, 1], [1, 1]]
_LAYERS_KERNEL = [_W1, _W2, _W3, _W4, _W56, _W7]                 # ReLU on all but last


def mlp_kernel(x_ref, out_ref):
    """x_ref: (3, SB, 128) activations with batch packed into (sublane, lane).
    out_ref: (1, SB, 128)."""
    # Load each feature row as a dense (SB, 128) tile; upcast (no-op for f32,
    # enables bf16 inputs on the DMA side while keeping f32 VPU math).
    rows = [x_ref[k].astype(jnp.float32) for k in range(3)]

    n_layers = len(_LAYERS_KERNEL)
    for li, W in enumerate(_LAYERS_KERNEL):
        new_rows = []
        for out_row in W:                              # fully unrolled VPU layer
            terms = [(k, w) for k, w in enumerate(out_row) if w != 0]
            # Start the accumulation from a +1 term when possible (avoids a
            # leading negate instruction).
            terms.sort(key=lambda kw: 0 if kw[1] == 1 else 1)
            acc = None
            for k, w in terms:
                r = rows[k]
                if acc is None:
                    acc = r if w == 1 else (-r if w == -1 else float(w) * r)
                elif w == 1:
                    acc = acc + r
                elif w == -1:
                    acc = acc - r
                else:
                    acc = acc + float(w) * r
            if acc is None:                            # all-zero weight row
                acc = jnp.zeros_like(rows[0])
            if li < n_layers - 1:                      # ReLU on all but the last layer
                acc = jnp.maximum(acc, 0.0)
            new_rows.append(acc)
        rows = new_rows

    out_ref[...] = rows[0][None].astype(out_ref.dtype)  # (1, SB, 128) dense store


def mynetwork_forward_fm(x_fm, *, sb=512):
    """Fast path: feature-major activations x_fm (3, B) -> (B, 1).

    Produce the (3, B) layout upstream (or fuse the transpose into the
    producer); this wrapper performs no transpose itself.  `sb` is the number
    of 8-sublane-aligned 128-sample columns per grid step (~SB*128 samples,
    default 512 -> 64K samples / ~1.5 MiB of input per step).
    """
    f, b = x_fm.shape
    assert f == 3, f

    nb = pl.cdiv(b, 128)                                    # 128-lane columns
    sb = max(8, min(int(sb), ((nb + 7) // 8) * 8))          # multiple of 8, <= need
    nb_pad = ((nb + sb - 1) // sb) * sb                     # whole tiles
    b_pad = nb_pad * 128
    if b_pad != b:
        # Ragged batch: zero-pad to a whole number of (sb, 128) tiles.
        x_fm = jnp.pad(x_fm, ((0, 0), (0, b_pad - b)))

    x3 = x_fm.reshape(3, nb_pad, 128)                       # free contiguous reshape

    # 2x(double-buffered in+out tiles) + ~8 live intermediate rows, with slack.
    tile_row_bytes = sb * 128 * 4
    vmem_limit = min(64 * 1024 * 1024, max(16 * 1024 * 1024, 32 * tile_row_bytes))

    out3 = pl.pallas_call(
        mlp_kernel,
        out_shape=jax.ShapeDtypeStruct((1, nb_pad, 128), jnp.float32),
        grid=(nb_pad // sb,),
        in_specs=[pl.BlockSpec((3, sb, 128), lambda i: (0, i, 0))],
        out_specs=pl.BlockSpec((1, sb, 128), lambda i: (0, i, 0)),
        compiler_params=pltpu.CompilerParams(
            dimension_semantics=("parallel",),              # megacore on v7x
            vmem_limit_bytes=vmem_limit,
        ),
    )(x3)

    out = out3.reshape(b_pad, 1)                            # cheap reshape back
    return out[:b] if b_pad != b else out


def mynetwork_forward(x, *, sb=512):
    """PyTorch-compatible entry: x (B, 3) -> (B, 1).

    Note: this path pays one (B,3)->(3,B) transpose (an extra HBM round trip).
    Callers that can emit the feature-major layout should use
    mynetwork_forward_fm directly.
    """
    return mynetwork_forward_fm(jnp.transpose(x), sb=sb)


def reference_forward(x):
    """Pure-JAX reference identical to the PyTorch module (y = x @ W.T, zero bias)."""
    h = x
    for i, W in enumerate(_LAYERS_REF):
        h = h @ jnp.asarray(W, dtype=jnp.float32).T
        if i < len(_LAYERS_REF) - 1:
            h = jnp.maximum(h, 0.0)
    return h


if __name__ == "__main__":
    key = jax.random.PRNGKey(0)
    B = 8
    x = jax.random.normal(key, (B, 3), dtype=jnp.float32)   # PyTorch-shaped input
    x_fm = jnp.transpose(x)                                  # producer-side feature-major layout

    out = jax.block_until_ready(mynetwork_forward_fm(x_fm))
    ref = reference_forward(x)
    assert out.shape == (B, 1), out.shape
    assert jnp.allclose(out, ref, atol=1e-5, rtol=1e-5), (out, ref)

    # Also exercise the PyTorch-layout compatibility wrapper.
    out2 = jax.block_until_ready(mynetwork_forward(x))
    assert jnp.allclose(out2, ref, atol=1e-5, rtol=1e-5), (out2, ref)

    print("KERNEL_OK")
</pallas_src>

<mosaic_0001>
module attributes {stable_mosaic.version = 11 : i64} {
  func.func @mlp_kernel(%arg0: i32, %arg1: memref<3x8x128xf32, #tpu.memory_space<vmem>>, %arg2: memref<1x8x128xf32, #tpu.memory_space<vmem>>) attributes {dimension_semantics = [#tpu.dimension_semantics<parallel>], iteration_bounds = array<i64: 1>, scalar_prefetch = 0 : i64, scratch_operands = 0 : i64, tpu.core_type = #tpu.core_type<tc>, window_params = [{transform_indices = @transform_0, window_bounds = array<i64: 3, 8, 128>}, {transform_indices = @transform_1, window_bounds = array<i64: 1, 8, 128>}]} {
    %c0 = arith.constant 0 : index
    %c0_0 = arith.constant 0 : index
    %c0_1 = arith.constant 0 : index
    %0 = vector.load %arg1[%c0, %c0_0, %c0_1] : memref<3x8x128xf32, #tpu.memory_space<vmem>>, vector<1x8x128xf32>
    %1 = vector.shape_cast %0 : vector<1x8x128xf32> to vector<8x128xf32>
    %c1 = arith.constant 1 : index
    %c0_2 = arith.constant 0 : index
    %c0_3 = arith.constant 0 : index
    %2 = vector.load %arg1[%c1, %c0_2, %c0_3] : memref<3x8x128xf32, #tpu.memory_space<vmem>>, vector<1x8x128xf32>
    %3 = vector.shape_cast %2 : vector<1x8x128xf32> to vector<8x128xf32>
    %c2 = arith.constant 2 : index
    %c0_4 = arith.constant 0 : index
    %c0_5 = arith.constant 0 : index
    %4 = vector.load %arg1[%c2, %c0_4, %c0_5] : memref<3x8x128xf32, #tpu.memory_space<vmem>>, vector<1x8x128xf32>
    %5 = vector.shape_cast %4 : vector<1x8x128xf32> to vector<8x128xf32>
    %cst = arith.constant 0.000000e+00 : f32
    %6 = vector.broadcast %cst : f32 to vector<8x128xf32>
    %7 = arith.maximumf %5, %6 : vector<8x128xf32>
    %cst_6 = arith.constant 0.000000e+00 : f32
    %8 = vector.broadcast %cst_6 : f32 to vector<8x128xf32>
    %9 = arith.maximumf %3, %8 : vector<8x128xf32>
    %cst_7 = arith.constant 0.000000e+00 : f32
    %10 = vector.broadcast %cst_7 : f32 to vector<8x128xf32>
    %11 = arith.maximumf %1, %10 : vector<8x128xf32>
    %12 = arith.addf %1, %3 : vector<8x128xf32>
    %cst_8 = arith.constant 0.000000e+00 : f32
    %13 = vector.broadcast %cst_8 : f32 to vector<8x128xf32>
    %14 = arith.maximumf %12, %13 : vector<8x128xf32>
    %15 = arith.addf %3, %5 : vector<8x128xf32>
    %cst_9 = arith.constant 0.000000e+00 : f32
    %16 = vector.broadcast %cst_9 : f32 to vector<8x128xf32>
    %17 = arith.maximumf %15, %16 : vector<8x128xf32>
    %18 = arith.addf %7, %9 : vector<8x128xf32>
    %19 = arith.subf %18, %11 : vector<8x128xf32>
    %cst_10 = arith.constant 0.000000e+00 : f32
    %20 = vector.broadcast %cst_10 : f32 to vector<8x128xf32>
    %21 = arith.maximumf %19, %20 : vector<8x128xf32>
    %22 = arith.addf %11, %14 : vector<8x128xf32>
    %23 = arith.subf %22, %17 : vector<8x128xf32>
    %cst_11 = arith.constant 0.000000e+00 : f32
    %24 = vector.broadcast %cst_11 : f32 to vector<8x128xf32>
    %25 = arith.maximumf %23, %24 : vector<8x128xf32>
    %26 = arith.addf %21, %25 : vector<8x128xf32>
    %cst_12 = arith.constant 0.000000e+00 : f32
    %27 = vector.broadcast %cst_12 : f32 to vector<8x128xf32>
    %28 = arith.maximumf %26, %27 : vector<8x128xf32>
    %29 = arith.subf %21, %25 : vector<8x128xf32>
    %cst_13 = arith.constant 0.000000e+00 : f32
    %30 = vector.broadcast %cst_13 : f32 to vector<8x128xf32>
    %31 = arith.maximumf %29, %30 : vector<8x128xf32>
    %cst_14 = arith.constant 2.000000e+00 : f32
    %32 = vector.broadcast %cst_14 : f32 to vector<8x128xf32>
    %33 = arith.mulf %32, %25 : vector<8x128xf32>
    %34 = arith.addf %21, %33 : vector<8x128xf32>
    %cst_15 = arith.constant 0.000000e+00 : f32
    %35 = vector.broadcast %cst_15 : f32 to vector<8x128xf32>
    %36 = arith.maximumf %34, %35 : vector<8x128xf32>
    %37 = arith.subf %28, %31 : vector<8x128xf32>
    %cst_16 = arith.constant 0.000000e+00 : f32
    %38 = vector.broadcast %cst_16 : f32 to vector<8x128xf32>
    %39 = arith.maximumf %37, %38 : vector<8x128xf32>
    %40 = arith.subf %36, %31 : vector<8x128xf32>
    %cst_17 = arith.constant 0.000000e+00 : f32
    %41 = vector.broadcast %cst_17 : f32 to vector<8x128xf32>
    %42 = arith.maximumf %40, %41 : vector<8x128xf32>
    %43 = arith.subf %42, %39 : vector<8x128xf32>
    %cst_18 = arith.constant 0.000000e+00 : f32
    %44 = vector.broadcast %cst_18 : f32 to vector<8x128xf32>
    %45 = arith.maximumf %43, %44 : vector<8x128xf32>
    %46 = arith.addf %39, %42 : vector<8x128xf32>
    %cst_19 = arith.constant 0.000000e+00 : f32
    %47 = vector.broadcast %cst_19 : f32 to vector<8x128xf32>
    %48 = arith.maximumf %46, %47 : vector<8x128xf32>
    %49 = arith.subf %45, %48 : vector<8x128xf32>
    %50 = vector.shape_cast %49 : vector<8x128xf32> to vector<1x8x128xf32>
    %c0_20 = arith.constant 0 : index
    %c0_21 = arith.constant 0 : index
    %c0_22 = arith.constant 0 : index
    %51 = vector.load %arg2[%c0_20, %c0_21, %c0_22] : memref<1x8x128xf32, #tpu.memory_space<vmem>>, vector<1x8x128xf32>
    tpu.vector_store %arg2[%c0_20, %c0_21, %c0_22], %50 {strides = array<i32>} : memref<1x8x128xf32, #tpu.memory_space<vmem>>, vector<1x8x128xf32>,
    return
  }
  func.func @transform_0(%arg0: i32) -> (i32, i32, i32) {
    %c0_i32 = arith.constant 0 : i32
    %c0_i32_0 = arith.constant 0 : i32
    %c0_i32_1 = arith.constant 0 : i32
    return %c0_i32, %arg0, %c0_i32_0 : i32, i32, i32
  }
  func.func @transform_1(%arg0: i32) -> (i32, i32, i32) {
    %c0_i32 = arith.constant 0 : i32
    %c0_i32_0 = arith.constant 0 : i32
    %c0_i32_1 = arith.constant 0 : i32
    return %c0_i32, %arg0, %c0_i32_0 : i32, i32, i32
  }
}

</mosaic_0001>

<bundles_post_ra>
// kernel: tpu_custom_call.1
= control target key start
LH: loop header
LB: loop body
LE: loop exit
PB: predicated region body
PF: predicated region fallthrough
CT: control target
= control target key end

     0   :  { %6 = vsyncpa [#allocation3], 0  ;;  %s141_s0 = inlined_call_operand.hbm [shape: f32[3,8,128], index: 0, kind: input, shape index: {}]   ;;  %s142_s1 = inlined_call_operand.hbm [shape: f32[1,8,128], index: 1, kind: output, shape index: {}]  }
   0x1   :  { %7 = vsyncpa [#allocation4], 0  ;;  %s121_s6 = smov [#allocation2]  }
   0x2   :  { %s13_s7 = sshll.u32 %s121_s6, 4  ;;  %s14_s7 = int_to_ptr.vmem [resolvable:$true] %s13_s7 }
   0x3   :  { %s85_s8 = scalar_lea.vmem %s14_s7, 384  ;;  %p90_p1 = scmp.lt.s32.totalorder %s14_s7, %s14_s7 }
   0x4   :  { %p86_p0 = scmp.ne.s32.totalorder %s14_s7, %s85_s8  ;;  %p91_p2 = scmp.lt.s32.totalorder %s85_s8, %s85_s8 }
   0x6   :  { %p92_p3 = por %p91_p2, %p90_p1 }
   0x8   :  { %p93_p4 = pnand %p92_p3, %p86_p0 }
   0xa   :  { %96 = shalt.err (!%p93_p4)
}
   0xb   :  { %s122_s9 = smov 128   ;;  %s123_s10 = smov 8  }
   0xc   :  { %19 = dma.hbm_to_vmem [thread:$0]  %s141_s0, 384, %s14_s7, [#allocation3], %s122_s9, %s122_s9, %s123_s10  }
   0xd   :  { %117 = dma.done.wait [#allocation3], 384  }
   0xe   :  { %118 = vsyncadd [#allocation3], 4294966912  ;;  %v23_v0 = vld [vmem:[#allocation2] sm:$0xff]  ;;  %v25_v1 = vld [vmem:[#allocation2 + $0x8] sm:$0xff]  ;;  %s124_s0 = smov [#allocation5]  }
   0xf   :  { %v27_v2 = vld [vmem:[#allocation2 + $0x10] sm:$0xff]  ;;  %v29_v4 = vmax.f32 %v25_v1, 0.0  ;;  %v30_v5 = vmax.f32 %v23_v0, 0.0  ;;  %v31_v6 = vadd.f32 %v25_v1, %v23_v0  ;;  %s64_s13 = sshll.u32 %s124_s0, 4  ;;  %s65_s13 = int_to_ptr.vmem [resolvable:$true] %s64_s13 }
  0x10   :  { %v28_v3 = vmax.f32 %v27_v2, 0.0  ;;  %v33_v7 = vadd.f32 %v27_v2, %v25_v1  ;;  %s97_s14 = scalar_lea.vmem %s65_s13, 128  ;;  %p102_p6 = scmp.lt.s32.totalorder %s65_s13, %s65_s13 }
  0x11   :  { %v32_v8 = vmax.f32 %v31_v6, 0.0  ;;  %p98_p5 = scmp.ne.s32.totalorder %s65_s13, %s97_s14  ;;  %p103_p7 = scmp.lt.s32.totalorder %s97_s14, %s97_s14 }
  0x12   :  { %v35_v9 = vadd.f32 %v29_v4, %v28_v3  ;;  %v34_v10 = vmax.f32 %v33_v7, 0.0 }
  0x13   :  { %v38_v12 = vadd.f32 %v32_v8, %v30_v5  ;;  %p104_p8 = por %p103_p7, %p102_p6 }
  0x14   :  { %v36_v11 = vsub.f32 %v35_v9, %v30_v5 }
  0x15   :  { %v39_v14 = vsub.f32 %v38_v12, %v34_v10  ;;  %p105_p9 = pnand %p104_p8, %p98_p5 }
  0x16   :  { %v37_v13 = vmax.f32 %v36_v11, 0.0 }
  0x17   :  { %v40_v15 = vmax.f32 %v39_v14, 0.0 }
  0x19   :  { %v41_v16 = vadd.f32 %v40_v15, %v37_v13  ;;  %v43_v17 = vsub.f32 %v37_v13, %v40_v15  ;;  %v45_v18 = vmul.f32 2.0, %v40_v15 }
  0x1b   :  { %v42_v19 = vmax.f32 %v41_v16, 0.0  ;;  %v44_v20 = vmax.f32 %v43_v17, 0.0  ;;  %v46_v21 = vadd.f32 %v45_v18, %v37_v13 }
  0x1d   :  { %v47_v22 = vmax.f32 %v46_v21, 0.0  ;;  %v48_v23 = vsub.f32 %v42_v19, %v44_v20 }
  0x1f   :  { %v49_v24 = vmax.f32 %v48_v23, 0.0  ;;  %v50_v25 = vsub.f32 %v47_v22, %v44_v20 }
  0x21   :  { %v51_v26 = vmax.f32 %v50_v25, 0.0 }
  0x23   :  { %v52_v27 = vsub.f32 %v51_v26, %v49_v24  ;;  %v54_v28 = vadd.f32 %v51_v26, %v49_v24 }
  0x25   :  { %v53_v29 = vmax.f32 %v52_v27, 0.0  ;;  %v55_v30 = vmax.f32 %v54_v28, 0.0 }
  0x27   :  { %v56_v31 = vsub.f32 %v53_v29, %v55_v30 }
  0x29   :  { %57 = vst [vmem:[#allocation5] sm:$0xff] %v56_v31 }
  0x2a   :  { %108 = shalt.err (!%p105_p9)
}
  0x2b   :  { %67 = dma.vmem_to_hbm [thread:$0]  %s65_s13, 128, %s142_s1, [#allocation4]  }
  0x2c   :  { %119 = dma.done.wait [#allocation4], 128  }
  0x2d   :  { %120 = vsyncadd [#allocation4], 4294967168 }
  0x2e   :  { %71 = vsyncpa [#allocation3], 1 }
  0x2f   :  { %72 = vsyncpa [#allocation4], 1 }

</bundles_post_ra>
